<compile_context>
chip_gen: v7x
topology: tpu7x:2x2x1
jax: 0.10.0
libtpu: 0.0.40
codegen_flags: <defaults>
</compile_context>

<pallas_src>
import functools

import jax
import jax.numpy as jnp
from jax.experimental import pallas as pl
from jax.experimental.pallas import tpu as pltpu


def _layernorm(v, eps=1e-3):
    # nn.LayerNorm(dim, eps=0.001, elementwise_affine=False): biased variance.
    mu = jnp.mean(v, axis=-1, keepdims=True)
    var = jnp.mean((v - mu) ** 2, axis=-1, keepdims=True)
    return (v - mu) * jax.lax.rsqrt(var + eps)


def _transformer_block_kernel(
    x_ref, mods_ref,
    wqkv_ref, wo_ref, wff1_ref, wff2_ref,
    bias_d_ref, bff1_ref,
    out_ref,
    *, heads, dim_head,
):
    f32 = jnp.float32
    bf16 = jnp.bfloat16

    x = x_ref[0].astype(f32)            # (N, D)
    mods = mods_ref[0].astype(f32)      # (4, D): gamma1, beta1, gamma2, beta2
    gamma1, beta1 = mods[0:1, :], mods[1:2, :]
    gamma2, beta2 = mods[2:3, :], mods[3:4, :]

    # ---- SelfModulatedLayerNorm 1 (latent modulation precomputed outside) ----
    h = _layernorm(x) * (1.0 + gamma1) + beta1               # (N, D) f32
    h_bf = h.astype(bf16)

    # ---- L2-distance (ViTGAN) multi-head attention ----
    scale = dim_head ** -0.5
    o_heads = []
    for hd in range(heads):             # unrolled; static leading-axis indexing
        wq = wqkv_ref[0 * heads + hd]   # (D, dh) bf16
        wk = wqkv_ref[1 * heads + hd]
        wv = wqkv_ref[2 * heads + hd]
        q = jnp.dot(h_bf, wq, preferred_element_type=f32)    # (N, dh) f32
        k = jnp.dot(h_bf, wk, preferred_element_type=f32)
        v = jnp.dot(h_bf, wv, preferred_element_type=f32)

        q2 = jnp.sum(q * q, axis=-1, keepdims=True)          # (N, 1)
        k2 = jnp.sum(k * k, axis=-1, keepdims=True)          # (N, 1)
        qk = jnp.dot(q.astype(bf16), k.T.astype(bf16),
                     preferred_element_type=f32)              # (N, N)
        dots = -(q2 + k2.T - 2.0 * qk) * scale                # -||q_i - k_j||^2 * scale

        m = jnp.max(dots, axis=-1, keepdims=True)
        e = jnp.exp(dots - m)
        attn = e * pl.reciprocal(jnp.sum(e, axis=-1, keepdims=True), approx=True)
        o_heads.append(jnp.dot(attn.astype(bf16), v.astype(bf16),
                               preferred_element_type=f32))   # (N, dh)

    # single fused output projection over the concatenated heads
    o_cat = jnp.concatenate(o_heads, axis=-1)                 # (N, inner)
    attn_out = jnp.dot(o_cat.astype(bf16), wo_ref[...],
                       preferred_element_type=f32) + bias_d_ref[0:1, :]
    x1 = h + attn_out                                          # residual

    # ---- SelfModulatedLayerNorm 2 ----
    h2 = _layernorm(x1) * (1.0 + gamma2) + beta2

    # ---- FeedForward (GELU MLP), residual ----
    f1 = jnp.dot(h2.astype(bf16), wff1_ref[...],
                 preferred_element_type=f32) + bff1_ref[...]
    g = jax.nn.gelu(f1, approximate=True)
    f2 = jnp.dot(g.astype(bf16), wff2_ref[...],
                 preferred_element_type=f32) + bias_d_ref[1:2, :]

    out_ref[0] = (h2 + f2).astype(out_ref.dtype)


def transformer_block(x, latent, params, *, heads, dim_head):
    B, N, D = x.shape
    f32, bf16 = jnp.float32, jnp.bfloat16

    lat = latent.reshape(B, D).astype(f32)

    # Hoisted latent modulation for both SMLNs: one batched XLA matmul instead
    # of four 1-row MXU matmuls per grid step inside the kernel.
    gamma1 = lat @ params["wg1"] + params["bg1"]
    beta1 = lat @ params["wb1"] + params["bb1"]
    gamma2 = lat @ params["wg2"] + params["bg2"]
    beta2 = lat @ params["wb2"] + params["bb2"]
    mods = jnp.stack([gamma1, beta1, gamma2, beta2], axis=1)          # (B, 4, D)

    # qkv weight laid out so (q/k/v, head) selection is one static leading index.
    wqkv = params["wqkv"].reshape(D, 3, heads, dim_head).transpose(1, 2, 0, 3)
    wqkv = wqkv.reshape(3 * heads, D, dim_head).astype(bf16)          # (3h, D, dh)
    wo = params["wo"].astype(bf16)                                    # (inner, D)
    wff1 = params["wff1"].astype(bf16)                                # (D, mlp)
    wff2 = params["wff2"].astype(bf16)                                # (mlp, D)

    # Pack the two D-wide biases into one input (fewer tiny padded VMEM tiles).
    bias_d = jnp.concatenate([params["bo"], params["bff2"]], axis=0)  # (2, D)
    bff1 = params["bff1"]                                             # (1, mlp)

    def batch_spec(shape):
        n_rest = len(shape) - 1
        return pl.BlockSpec(shape, lambda b, _n=n_rest: (b,) + (0,) * _n)

    def full_spec(a):
        zeros = (0,) * a.ndim
        return pl.BlockSpec(a.shape, lambda b, _z=zeros: _z)

    kernel = functools.partial(_transformer_block_kernel,
                               heads=heads, dim_head=dim_head)
    return pl.pallas_call(
        kernel,
        out_shape=jax.ShapeDtypeStruct((B, N, D), x.dtype),
        grid=(B,),
        in_specs=[
            batch_spec((1, N, D)),      # x
            batch_spec((1, 4, D)),      # precomputed gamma/beta modulation
            full_spec(wqkv), full_spec(wo), full_spec(wff1), full_spec(wff2),
            full_spec(bias_d), full_spec(bff1),
        ],
        out_specs=batch_spec((1, N, D)),
        compiler_params=pltpu.CompilerParams(
            dimension_semantics=("parallel",)),   # batch elems independent
    )(x, mods, wqkv, wo, wff1, wff2, bias_d, bff1)


def init_params(key, dim, heads, dim_head, mlp_dim):
    """Deterministic synthetic parameters, EqualLinear 1/sqrt(fan_in) folded in."""
    inner = heads * dim_head
    ks = jax.random.split(key, 8)

    def eq_w(k, fan_in, fan_out):
        return jax.random.normal(k, (fan_in, fan_out), jnp.float32) / jnp.sqrt(float(fan_in))

    z = lambda n: jnp.zeros((1, n), jnp.float32)  # EqualLinear bias init = 0
    return {
        "wg1": eq_w(ks[0], dim, dim), "bg1": z(dim),
        "wb1": eq_w(ks[1], dim, dim), "bb1": z(dim),
        "wqkv": eq_w(ks[2], dim, 3 * inner),
        "wo": eq_w(ks[3], inner, dim), "bo": z(dim),
        "wg2": eq_w(ks[4], dim, dim), "bg2": z(dim),
        "wb2": eq_w(ks[5], dim, dim), "bb2": z(dim),
        "wff1": eq_w(ks[6], dim, mlp_dim), "bff1": z(mlp_dim),
        "wff2": eq_w(ks[7], mlp_dim, dim), "bff2": z(dim),
    }


def transformer_block_ref(x, latent, params, *, heads, dim_head):
    """Pure-JAX reference with the same math and the same mixed-precision policy
    as the kernel (bf16 MXU operands, f32 accumulation / elementwise math)."""
    f32, bf16 = jnp.float32, jnp.bfloat16
    B, N, D = x.shape
    inner = heads * dim_head
    scale = dim_head ** -0.5
    lat = latent.reshape(B, D).astype(f32)
    c = lambda t: t.astype(bf16)

    def smln(v, gamma, beta):
        return _layernorm(v) * (1.0 + gamma[:, None, :]) + beta[:, None, :]

    gamma1 = lat @ params["wg1"] + params["bg1"]
    beta1 = lat @ params["wb1"] + params["bb1"]
    gamma2 = lat @ params["wg2"] + params["bg2"]
    beta2 = lat @ params["wb2"] + params["bb2"]

    h = smln(x.astype(f32), gamma1, beta1)                         # (B, N, D)

    wqkv = params["wqkv"].reshape(D, 3, heads, dim_head).transpose(1, 2, 0, 3)
    q = jnp.einsum("bnd,hde->bhne", c(h), c(wqkv[0]), preferred_element_type=f32)
    k = jnp.einsum("bnd,hde->bhne", c(h), c(wqkv[1]), preferred_element_type=f32)
    v = jnp.einsum("bnd,hde->bhne", c(h), c(wqkv[2]), preferred_element_type=f32)
    q2 = jnp.sum(q * q, axis=-1, keepdims=True)
    k2 = jnp.sum(k * k, axis=-1, keepdims=True)
    qk = jnp.einsum("bhie,bhje->bhij", c(q), c(k), preferred_element_type=f32)
    dots = -(q2 + jnp.swapaxes(k2, -1, -2) - 2.0 * qk) * scale
    attn = jax.nn.softmax(dots, axis=-1)
    o = jnp.einsum("bhij,bhje->bhie", c(attn), c(v), preferred_element_type=f32)
    o = o.transpose(0, 2, 1, 3).reshape(B, N, inner)
    attn_out = jnp.matmul(c(o), c(params["wo"]), preferred_element_type=f32) + params["bo"]
    x1 = h + attn_out

    h2 = smln(x1, gamma2, beta2)
    f1 = jnp.matmul(c(h2), c(params["wff1"]), preferred_element_type=f32) + params["bff1"]
    g = jax.nn.gelu(f1, approximate=True)
    f2 = jnp.matmul(c(g), c(params["wff2"]), preferred_element_type=f32) + params["bff2"]
    return h2 + f2


if __name__ == "__main__":
    B, N, D = 2, 8, 32          # batch, tokens, dim
    heads, dim_head, mlp_dim = 2, 16, 64

    key = jax.random.PRNGKey(0)
    kx, kl, kp = jax.random.split(key, 3)
    x = jax.random.normal(kx, (B, N, D), jnp.float32)
    latent = jax.random.normal(kl, (B, D), jnp.float32)
    params = init_params(kp, D, heads, dim_head, mlp_dim)

    out = transformer_block(x, latent, params, heads=heads, dim_head=dim_head)
    out = jax.block_until_ready(out)

    ref = transformer_block_ref(x, latent, params, heads=heads, dim_head=dim_head)
    assert out.shape == (B, N, D)
    max_err = float(jnp.max(jnp.abs(out - ref)))
    # Tolerance accounts for approx-reciprocal softmax + MXU accumulation order.
    assert jnp.allclose(out, ref, atol=2e-2, rtol=2e-2), max_err
    print("KERNEL_OK")
</pallas_src>

<mosaic_0001>
module attributes {stable_mosaic.version = 11 : i64} {
  func.func @_transformer_block_kernel(%arg0: i32, %arg1: memref<1x8x32xf32, #tpu.memory_space<vmem>>, %arg2: memref<1x4x32xf32, #tpu.memory_space<vmem>>, %arg3: memref<6x32x16xbf16, #tpu.memory_space<vmem>>, %arg4: memref<32x32xbf16, #tpu.memory_space<vmem>>, %arg5: memref<32x64xbf16, #tpu.memory_space<vmem>>, %arg6: memref<64x32xbf16, #tpu.memory_space<vmem>>, %arg7: memref<2x32xf32, #tpu.memory_space<vmem>>, %arg8: memref<1x64xf32, #tpu.memory_space<vmem>>, %arg9: memref<1x8x32xf32, #tpu.memory_space<vmem>>) attributes {dimension_semantics = [#tpu.dimension_semantics<parallel>], iteration_bounds = array<i64: 2>, scalar_prefetch = 0 : i64, scratch_operands = 0 : i64, tpu.core_type = #tpu.core_type<tc>, window_params = [{transform_indices = @transform_0, window_bounds = array<i64: 1, 8, 32>}, {transform_indices = @transform_1, window_bounds = array<i64: 1, 4, 32>}, {pipeline_mode = #tpu.pipeline_mode<synchronous>, transform_indices = @transform_2, window_bounds = array<i64: 6, 32, 16>}, {pipeline_mode = #tpu.pipeline_mode<synchronous>, transform_indices = @transform_3, window_bounds = array<i64: 32, 32>}, {pipeline_mode = #tpu.pipeline_mode<synchronous>, transform_indices = @transform_4, window_bounds = array<i64: 32, 64>}, {pipeline_mode = #tpu.pipeline_mode<synchronous>, transform_indices = @transform_5, window_bounds = array<i64: 64, 32>}, {pipeline_mode = #tpu.pipeline_mode<synchronous>, transform_indices = @transform_6, window_bounds = array<i64: 2, 32>}, {pipeline_mode = #tpu.pipeline_mode<synchronous>, transform_indices = @transform_7, window_bounds = array<i64: 1, 64>}, {transform_indices = @transform_8, window_bounds = array<i64: 1, 8, 32>}]} {
    %c0 = arith.constant 0 : index
    %c0_0 = arith.constant 0 : index
    %c0_1 = arith.constant 0 : index
    %0 = vector.load %arg1[%c0, %c0_0, %c0_1] : memref<1x8x32xf32, #tpu.memory_space<vmem>>, vector<1x8x32xf32>
    %1 = vector.shape_cast %0 : vector<1x8x32xf32> to vector<8x32xf32>
    %c0_2 = arith.constant 0 : index
    %c0_3 = arith.constant 0 : index
    %c0_4 = arith.constant 0 : index
    %2 = vector.load %arg2[%c0_2, %c0_3, %c0_4] : memref<1x4x32xf32, #tpu.memory_space<vmem>>, vector<1x4x32xf32>
    %3 = vector.shape_cast %2 : vector<1x4x32xf32> to vector<4x32xf32>
    %4 = vector.extract_strided_slice %3 {offsets = [0, 0], sizes = [1, 32], strides = [1, 1]} : vector<4x32xf32> to vector<1x32xf32>
    %5 = vector.extract_strided_slice %3 {offsets = [1, 0], sizes = [1, 32], strides = [1, 1]} : vector<4x32xf32> to vector<1x32xf32>
    %6 = vector.extract_strided_slice %3 {offsets = [2, 0], sizes = [1, 32], strides = [1, 1]} : vector<4x32xf32> to vector<1x32xf32>
    %7 = vector.extract_strided_slice %3 {offsets = [3, 0], sizes = [1, 32], strides = [1, 1]} : vector<4x32xf32> to vector<1x32xf32>
    %cst = arith.constant dense<0.000000e+00> : vector<8xf32>
    %8 = vector.multi_reduction <add>, %1, %cst [1] : vector<8x32xf32> to vector<8xf32>
    %9 = vector.shape_cast %8 : vector<8xf32> to vector<8x1xf32>
    %cst_5 = arith.constant 3.200000e+01 : f32
    %10 = vector.broadcast %cst_5 : f32 to vector<8x1xf32>
    %11 = arith.divf %9, %10 : vector<8x1xf32>
    %12 = vector.broadcast %11 : vector<8x1xf32> to vector<8x32xf32>
    %13 = arith.subf %1, %12 : vector<8x32xf32>
    %14 = arith.mulf %13, %13 : vector<8x32xf32>
    %cst_6 = arith.constant dense<0.000000e+00> : vector<8xf32>
    %15 = vector.multi_reduction <add>, %14, %cst_6 [1] : vector<8x32xf32> to vector<8xf32>
    %16 = vector.shape_cast %15 : vector<8xf32> to vector<8x1xf32>
    %cst_7 = arith.constant 3.200000e+01 : f32
    %17 = vector.broadcast %cst_7 : f32 to vector<8x1xf32>
    %18 = arith.divf %16, %17 : vector<8x1xf32>
    %19 = vector.broadcast %11 : vector<8x1xf32> to vector<8x32xf32>
    %20 = arith.subf %1, %19 : vector<8x32xf32>
    %cst_8 = arith.constant 1.000000e-03 : f32
    %21 = vector.broadcast %cst_8 : f32 to vector<8x1xf32>
    %22 = arith.addf %18, %21 : vector<8x1xf32>
    %23 = math.rsqrt %22 : vector<8x1xf32>
    %24 = vector.broadcast %23 : vector<8x1xf32> to vector<8x32xf32>
    %25 = arith.mulf %20, %24 : vector<8x32xf32>
    %cst_9 = arith.constant 1.000000e+00 : f32
    %26 = vector.broadcast %cst_9 : f32 to vector<1x32xf32>
    %27 = arith.addf %26, %4 : vector<1x32xf32>
    %28 = vector.broadcast %27 : vector<1x32xf32> to vector<8x32xf32>
    %29 = arith.mulf %25, %28 : vector<8x32xf32>
    %30 = vector.broadcast %5 : vector<1x32xf32> to vector<8x32xf32>
    %31 = arith.addf %29, %30 : vector<8x32xf32>
    %32 = arith.truncf %31 : vector<8x32xf32> to vector<8x32xbf16>
    %c0_10 = arith.constant 0 : index
    %c0_11 = arith.constant 0 : index
    %c0_12 = arith.constant 0 : index
    %33 = vector.load %arg3[%c0_10, %c0_11, %c0_12] : memref<6x32x16xbf16, #tpu.memory_space<vmem>>, vector<1x32x16xbf16>
    %34 = vector.shape_cast %33 : vector<1x32x16xbf16> to vector<32x16xbf16>
    %c2 = arith.constant 2 : index
    %c0_13 = arith.constant 0 : index
    %c0_14 = arith.constant 0 : index
    %35 = vector.load %arg3[%c2, %c0_13, %c0_14] : memref<6x32x16xbf16, #tpu.memory_space<vmem>>, vector<1x32x16xbf16>
    %36 = vector.shape_cast %35 : vector<1x32x16xbf16> to vector<32x16xbf16>
    %c4 = arith.constant 4 : index
    %c0_15 = arith.constant 0 : index
    %c0_16 = arith.constant 0 : index
    %37 = vector.load %arg3[%c4, %c0_15, %c0_16] : memref<6x32x16xbf16, #tpu.memory_space<vmem>>, vector<1x32x16xbf16>
    %38 = vector.shape_cast %37 : vector<1x32x16xbf16> to vector<32x16xbf16>
    %cst_17 = arith.constant dense<0.000000e+00> : vector<8x16xf32>
    %39 = tpu.matmul %32, %34, %cst_17 {dimension_numbers = #tpu.dot_dimension_numbers<[1], [0], [0], [1], [0, 0, 1, 1], [], []>} : vector<8x32xbf16>, vector<32x16xbf16>, vector<8x16xf32> -> vector<8x16xf32>
    %cst_18 = arith.constant dense<0.000000e+00> : vector<8x16xf32>
    %40 = tpu.matmul %32, %36, %cst_18 {dimension_numbers = #tpu.dot_dimension_numbers<[1], [0], [0], [1], [0, 0, 1, 1], [], []>} : vector<8x32xbf16>, vector<32x16xbf16>, vector<8x16xf32> -> vector<8x16xf32>
    %cst_19 = arith.constant dense<0.000000e+00> : vector<8x16xf32>
    %41 = tpu.matmul %32, %38, %cst_19 {dimension_numbers = #tpu.dot_dimension_numbers<[1], [0], [0], [1], [0, 0, 1, 1], [], []>} : vector<8x32xbf16>, vector<32x16xbf16>, vector<8x16xf32> -> vector<8x16xf32>
    %42 = arith.mulf %39, %39 : vector<8x16xf32>
    %cst_20 = arith.constant dense<0.000000e+00> : vector<8xf32>
    %43 = vector.multi_reduction <add>, %42, %cst_20 [1] : vector<8x16xf32> to vector<8xf32>
    %44 = vector.shape_cast %43 : vector<8xf32> to vector<8x1xf32>
    %45 = arith.mulf %40, %40 : vector<8x16xf32>
    %cst_21 = arith.constant dense<0.000000e+00> : vector<8xf32>
    %46 = vector.multi_reduction <add>, %45, %cst_21 [1] : vector<8x16xf32> to vector<8xf32>
    %47 = vector.shape_cast %46 : vector<8xf32> to vector<8x1xf32>
    %48 = arith.truncf %39 : vector<8x16xf32> to vector<8x16xbf16>
    %49 = tpu.transpose %40, [1, 0] : vector<8x16xf32> -> vector<16x8xf32>
    %50 = arith.truncf %49 : vector<16x8xf32> to vector<16x8xbf16>
    %cst_22 = arith.constant dense<0.000000e+00> : vector<8x8xf32>
    %51 = tpu.matmul %48, %50, %cst_22 {dimension_numbers = #tpu.dot_dimension_numbers<[1], [0], [0], [1], [0, 0, 1, 1], [], []>} : vector<8x16xbf16>, vector<16x8xbf16>, vector<8x8xf32> -> vector<8x8xf32>
    %52 = tpu.transpose %47, [1, 0] : vector<8x1xf32> -> vector<1x8xf32>
    %53 = vector.broadcast %44 : vector<8x1xf32> to vector<8x8xf32>
    %54 = vector.broadcast %52 : vector<1x8xf32> to vector<8x8xf32>
    %55 = arith.addf %53, %54 : vector<8x8xf32>
    %cst_23 = arith.constant 2.000000e+00 : f32
    %56 = vector.broadcast %cst_23 : f32 to vector<8x8xf32>
    %57 = arith.mulf %56, %51 : vector<8x8xf32>
    %58 = arith.subf %55, %57 : vector<8x8xf32>
    %cst_24 = arith.constant 0.000000e+00 : f32
    %59 = vector.broadcast %cst_24 : f32 to vector<8x8xf32>
    %60 = arith.subf %59, %58 : vector<8x8xf32>
    %cst_25 = arith.constant 2.500000e-01 : f32
    %61 = vector.broadcast %cst_25 : f32 to vector<8x8xf32>
    %62 = arith.mulf %60, %61 : vector<8x8xf32>
    %cst_26 = arith.constant dense<0xFF800000> : vector<8xf32>
    %63 = vector.multi_reduction <maximumf>, %62, %cst_26 [1] : vector<8x8xf32> to vector<8xf32>
    %64 = vector.shape_cast %63 : vector<8xf32> to vector<8x1xf32>
    %65 = vector.broadcast %64 : vector<8x1xf32> to vector<8x8xf32>
    %66 = arith.subf %62, %65 : vector<8x8xf32>
    %67 = math.exp %66 : vector<8x8xf32>
    %cst_27 = arith.constant dense<0.000000e+00> : vector<8xf32>
    %68 = vector.multi_reduction <add>, %67, %cst_27 [1] : vector<8x8xf32> to vector<8xf32>
    %69 = vector.shape_cast %68 : vector<8xf32> to vector<8x1xf32>
    %70 = tpu.reciprocal %69 {approx = true} : vector<8x1xf32> -> vector<8x1xf32>
    %71 = vector.broadcast %70 : vector<8x1xf32> to vector<8x8xf32>
    %72 = arith.mulf %67, %71 : vector<8x8xf32>
    %73 = arith.truncf %72 : vector<8x8xf32> to vector<8x8xbf16>
    %74 = arith.truncf %41 : vector<8x16xf32> to vector<8x16xbf16>
    %cst_28 = arith.constant dense<0.000000e+00> : vector<8x16xf32>
    %75 = tpu.matmul %73, %74, %cst_28 {dimension_numbers = #tpu.dot_dimension_numbers<[1], [0], [0], [1], [0, 0, 1, 1], [], []>} : vector<8x8xbf16>, vector<8x16xbf16>, vector<8x16xf32> -> vector<8x16xf32>
    %c1 = arith.constant 1 : index
    %c0_29 = arith.constant 0 : index
    %c0_30 = arith.constant 0 : index
    %76 = vector.load %arg3[%c1, %c0_29, %c0_30] : memref<6x32x16xbf16, #tpu.memory_space<vmem>>, vector<1x32x16xbf16>
    %77 = vector.shape_cast %76 : vector<1x32x16xbf16> to vector<32x16xbf16>
    %c3 = arith.constant 3 : index
    %c0_31 = arith.constant 0 : index
    %c0_32 = arith.constant 0 : index
    %78 = vector.load %arg3[%c3, %c0_31, %c0_32] : memref<6x32x16xbf16, #tpu.memory_space<vmem>>, vector<1x32x16xbf16>
    %79 = vector.shape_cast %78 : vector<1x32x16xbf16> to vector<32x16xbf16>
    %c5 = arith.constant 5 : index
    %c0_33 = arith.constant 0 : index
    %c0_34 = arith.constant 0 : index
    %80 = vector.load %arg3[%c5, %c0_33, %c0_34] : memref<6x32x16xbf16, #tpu.memory_space<vmem>>, vector<1x32x16xbf16>
    %81 = vector.shape_cast %80 : vector<1x32x16xbf16> to vector<32x16xbf16>
    %cst_35 = arith.constant dense<0.000000e+00> : vector<8x16xf32>
    %82 = tpu.matmul %32, %77, %cst_35 {dimension_numbers = #tpu.dot_dimension_numbers<[1], [0], [0], [1], [0, 0, 1, 1], [], []>} : vector<8x32xbf16>, vector<32x16xbf16>, vector<8x16xf32> -> vector<8x16xf32>
    %cst_36 = arith.constant dense<0.000000e+00> : vector<8x16xf32>
    %83 = tpu.matmul %32, %79, %cst_36 {dimension_numbers = #tpu.dot_dimension_numbers<[1], [0], [0], [1], [0, 0, 1, 1], [], []>} : vector<8x32xbf16>, vector<32x16xbf16>, vector<8x16xf32> -> vector<8x16xf32>
    %cst_37 = arith.constant dense<0.000000e+00> : vector<8x16xf32>
    %84 = tpu.matmul %32, %81, %cst_37 {dimension_numbers = #tpu.dot_dimension_numbers<[1], [0], [0], [1], [0, 0, 1, 1], [], []>} : vector<8x32xbf16>, vector<32x16xbf16>, vector<8x16xf32> -> vector<8x16xf32>
    %85 = arith.mulf %82, %82 : vector<8x16xf32>
    %cst_38 = arith.constant dense<0.000000e+00> : vector<8xf32>
    %86 = vector.multi_reduction <add>, %85, %cst_38 [1] : vector<8x16xf32> to vector<8xf32>
    %87 = vector.shape_cast %86 : vector<8xf32> to vector<8x1xf32>
    %88 = arith.mulf %83, %83 : vector<8x16xf32>
    %cst_39 = arith.constant dense<0.000000e+00> : vector<8xf32>
    %89 = vector.multi_reduction <add>, %88, %cst_39 [1] : vector<8x16xf32> to vector<8xf32>
    %90 = vector.shape_cast %89 : vector<8xf32> to vector<8x1xf32>
    %91 = arith.truncf %82 : vector<8x16xf32> to vector<8x16xbf16>
    %92 = tpu.transpose %83, [1, 0] : vector<8x16xf32> -> vector<16x8xf32>
    %93 = arith.truncf %92 : vector<16x8xf32> to vector<16x8xbf16>
    %cst_40 = arith.constant dense<0.000000e+00> : vector<8x8xf32>
    %94 = tpu.matmul %91, %93, %cst_40 {dimension_numbers = #tpu.dot_dimension_numbers<[1], [0], [0], [1], [0, 0, 1, 1], [], []>} : vector<8x16xbf16>, vector<16x8xbf16>, vector<8x8xf32> -> vector<8x8xf32>
    %95 = tpu.transpose %90, [1, 0] : vector<8x1xf32> -> vector<1x8xf32>
    %96 = vector.broadcast %87 : vector<8x1xf32> to vector<8x8xf32>
    %97 = vector.broadcast %95 : vector<1x8xf32> to vector<8x8xf32>
    %98 = arith.addf %96, %97 : vector<8x8xf32>
    %cst_41 = arith.constant 2.000000e+00 : f32
    %99 = vector.broadcast %cst_41 : f32 to vector<8x8xf32>
    %100 = arith.mulf %99, %94 : vector<8x8xf32>
    %101 = arith.subf %98, %100 : vector<8x8xf32>
    %cst_42 = arith.constant 0.000000e+00 : f32
    %102 = vector.broadcast %cst_42 : f32 to vector<8x8xf32>
    %103 = arith.subf %102, %101 : vector<8x8xf32>
    %cst_43 = arith.constant 2.500000e-01 : f32
    %104 = vector.broadcast %cst_43 : f32 to vector<8x8xf32>
    %105 = arith.mulf %103, %104 : vector<8x8xf32>
    %cst_44 = arith.constant dense<0xFF800000> : vector<8xf32>
    %106 = vector.multi_reduction <maximumf>, %105, %cst_44 [1] : vector<8x8xf32> to vector<8xf32>
    %107 = vector.shape_cast %106 : vector<8xf32> to vector<8x1xf32>
    %108 = vector.broadcast %107 : vector<8x1xf32> to vector<8x8xf32>
    %109 = arith.subf %105, %108 : vector<8x8xf32>
    %110 = math.exp %109 : vector<8x8xf32>
    %cst_45 = arith.constant dense<0.000000e+00> : vector<8xf32>
    %111 = vector.multi_reduction <add>, %110, %cst_45 [1] : vector<8x8xf32> to vector<8xf32>
    %112 = vector.shape_cast %111 : vector<8xf32> to vector<8x1xf32>
    %113 = tpu.reciprocal %112 {approx = true} : vector<8x1xf32> -> vector<8x1xf32>
    %114 = vector.broadcast %113 : vector<8x1xf32> to vector<8x8xf32>
    %115 = arith.mulf %110, %114 : vector<8x8xf32>
    %116 = arith.truncf %115 : vector<8x8xf32> to vector<8x8xbf16>
    %117 = arith.truncf %84 : vector<8x16xf32> to vector<8x16xbf16>
    %cst_46 = arith.constant dense<0.000000e+00> : vector<8x16xf32>
    %118 = tpu.matmul %116, %117, %cst_46 {dimension_numbers = #tpu.dot_dimension_numbers<[1], [0], [0], [1], [0, 0, 1, 1], [], []>} : vector<8x8xbf16>, vector<8x16xbf16>, vector<8x16xf32> -> vector<8x16xf32>
    %119 = tpu.concatenate %75, %118 in 1 : vector<8x16xf32>, vector<8x16xf32> -> vector<8x32xf32>
    %120 = arith.truncf %119 : vector<8x32xf32> to vector<8x32xbf16>
    %c0_47 = arith.constant 0 : index
    %c0_48 = arith.constant 0 : index
    %121 = vector.load %arg4[%c0_47, %c0_48] : memref<32x32xbf16, #tpu.memory_space<vmem>>, vector<32x32xbf16>
    %cst_49 = arith.constant dense<0.000000e+00> : vector<8x32xf32>
    %122 = tpu.matmul %120, %121, %cst_49 {dimension_numbers = #tpu.dot_dimension_numbers<[1], [0], [0], [1], [0, 0, 1, 1], [], []>} : vector<8x32xbf16>, vector<32x32xbf16>, vector<8x32xf32> -> vector<8x32xf32>
    %c0_50 = arith.constant 0 : index
    %c0_51 = arith.constant 0 : index
    %123 = vector.load %arg7[%c0_50, %c0_51] : memref<2x32xf32, #tpu.memory_space<vmem>>, vector<1x32xf32>
    %124 = vector.broadcast %123 : vector<1x32xf32> to vector<8x32xf32>
    %125 = arith.addf %122, %124 : vector<8x32xf32>
    %126 = arith.addf %31, %125 : vector<8x32xf32>
    %cst_52 = arith.constant dense<0.000000e+00> : vector<8xf32>
    %127 = vector.multi_reduction <add>, %126, %cst_52 [1] : vector<8x32xf32> to vector<8xf32>
    %128 = vector.shape_cast %127 : vector<8xf32> to vector<8x1xf32>
    %cst_53 = arith.constant 3.200000e+01 : f32
    %129 = vector.broadcast %cst_53 : f32 to vector<8x1xf32>
    %130 = arith.divf %128, %129 : vector<8x1xf32>
    %131 = vector.broadcast %130 : vector<8x1xf32> to vector<8x32xf32>
    %132 = arith.subf %126, %131 : vector<8x32xf32>
    %133 = arith.mulf %132, %132 : vector<8x32xf32>
    %cst_54 = arith.constant dense<0.000000e+00> : vector<8xf32>
    %134 = vector.multi_reduction <add>, %133, %cst_54 [1] : vector<8x32xf32> to vector<8xf32>
    %135 = vector.shape_cast %134 : vector<8xf32> to vector<8x1xf32>
    %cst_55 = arith.constant 3.200000e+01 : f32
    %136 = vector.broadcast %cst_55 : f32 to vector<8x1xf32>
    %137 = arith.divf %135, %136 : vector<8x1xf32>
    %138 = vector.broadcast %130 : vector<8x1xf32> to vector<8x32xf32>
    %139 = arith.subf %126, %138 : vector<8x32xf32>
    %cst_56 = arith.constant 1.000000e-03 : f32
    %140 = vector.broadcast %cst_56 : f32 to vector<8x1xf32>
    %141 = arith.addf %137, %140 : vector<8x1xf32>
    %142 = math.rsqrt %141 : vector<8x1xf32>
    %143 = vector.broadcast %142 : vector<8x1xf32> to vector<8x32xf32>
    %144 = arith.mulf %139, %143 : vector<8x32xf32>
    %cst_57 = arith.constant 1.000000e+00 : f32
    %145 = vector.broadcast %cst_57 : f32 to vector<1x32xf32>
    %146 = arith.addf %145, %6 : vector<1x32xf32>
    %147 = vector.broadcast %146 : vector<1x32xf32> to vector<8x32xf32>
    %148 = arith.mulf %144, %147 : vector<8x32xf32>
    %149 = vector.broadcast %7 : vector<1x32xf32> to vector<8x32xf32>
    %150 = arith.addf %148, %149 : vector<8x32xf32>
    %151 = arith.truncf %150 : vector<8x32xf32> to vector<8x32xbf16>
    %c0_58 = arith.constant 0 : index
    %c0_59 = arith.constant 0 : index
    %152 = vector.load %arg5[%c0_58, %c0_59] : memref<32x64xbf16, #tpu.memory_space<vmem>>, vector<32x64xbf16>
    %cst_60 = arith.constant dense<0.000000e+00> : vector<8x64xf32>
    %153 = tpu.matmul %151, %152, %cst_60 {dimension_numbers = #tpu.dot_dimension_numbers<[1], [0], [0], [1], [0, 0, 1, 1], [], []>} : vector<8x32xbf16>, vector<32x64xbf16>, vector<8x64xf32> -> vector<8x64xf32>
    %c0_61 = arith.constant 0 : index
    %c0_62 = arith.constant 0 : index
    %154 = vector.load %arg8[%c0_61, %c0_62] : memref<1x64xf32, #tpu.memory_space<vmem>>, vector<1x64xf32>
    %155 = vector.broadcast %154 : vector<1x64xf32> to vector<8x64xf32>
    %156 = arith.addf %153, %155 : vector<8x64xf32>
    %157 = arith.mulf %156, %156 : vector<8x64xf32>
    %158 = arith.mulf %156, %157 : vector<8x64xf32>
    %cst_63 = arith.constant 4.471500e-02 : f32
    %159 = vector.broadcast %cst_63 : f32 to vector<8x64xf32>
    %160 = arith.mulf %159, %158 : vector<8x64xf32>
    %161 = arith.addf %156, %160 : vector<8x64xf32>
    %cst_64 = arith.constant 0.797884583 : f32
    %162 = vector.broadcast %cst_64 : f32 to vector<8x64xf32>
    %163 = arith.mulf %162, %161 : vector<8x64xf32>
    %164 = math.tanh %163 : vector<8x64xf32>
    %cst_65 = arith.constant 1.000000e+00 : f32
    %165 = vector.broadcast %cst_65 : f32 to vector<8x64xf32>
    %166 = arith.addf %165, %164 : vector<8x64xf32>
    %cst_66 = arith.constant 5.000000e-01 : f32
    %167 = vector.broadcast %cst_66 : f32 to vector<8x64xf32>
    %168 = arith.mulf %167, %166 : vector<8x64xf32>
    %169 = arith.mulf %156, %168 : vector<8x64xf32>
    %170 = arith.truncf %169 : vector<8x64xf32> to vector<8x64xbf16>
    %c0_67 = arith.constant 0 : index
    %c0_68 = arith.constant 0 : index
    %171 = vector.load %arg6[%c0_67, %c0_68] : memref<64x32xbf16, #tpu.memory_space<vmem>>, vector<64x32xbf16>
    %cst_69 = arith.constant dense<0.000000e+00> : vector<8x32xf32>
    %172 = tpu.matmul %170, %171, %cst_69 {dimension_numbers = #tpu.dot_dimension_numbers<[1], [0], [0], [1], [0, 0, 1, 1], [], []>} : vector<8x64xbf16>, vector<64x32xbf16>, vector<8x32xf32> -> vector<8x32xf32>
    %c1_70 = arith.constant 1 : index
    %c0_71 = arith.constant 0 : index
    %173 = vector.load %arg7[%c1_70, %c0_71] : memref<2x32xf32, #tpu.memory_space<vmem>>, vector<1x32xf32>
    %174 = vector.broadcast %173 : vector<1x32xf32> to vector<8x32xf32>
    %175 = arith.addf %172, %174 : vector<8x32xf32>
    %176 = arith.addf %150, %175 : vector<8x32xf32>
    %c0_72 = arith.constant 0 : index
    %c0_73 = arith.constant 0 : index
    %c0_74 = arith.constant 0 : index
    %177 = vector.load %arg9[%c0_72, %c0_73, %c0_74] : memref<1x8x32xf32, #tpu.memory_space<vmem>>, vector<1x8x32xf32>
    %178 = vector.shape_cast %177 : vector<1x8x32xf32> to vector<8x32xf32>
    %179 = vector.shape_cast %176 : vector<8x32xf32> to vector<1x8x32xf32>
    tpu.vector_store %arg9[%c0_72, %c0_73, %c0_74], %179 {strides = array<i32>} : memref<1x8x32xf32, #tpu.memory_space<vmem>>, vector<1x8x32xf32>,
    return
  }
  func.func @transform_0(%arg0: i32) -> (i32, i32, i32) {
    %c0_i32 = arith.constant 0 : i32
    %c0_i32_0 = arith.constant 0 : i32
    %c0_i32_1 = arith.constant 0 : i32
    return %arg0, %c0_i32, %c0_i32_0 : i32, i32, i32
  }
  func.func @transform_1(%arg0: i32) -> (i32, i32, i32) {
    %c0_i32 = arith.constant 0 : i32
    %c0_i32_0 = arith.constant 0 : i32
    %c0_i32_1 = arith.constant 0 : i32
    return %arg0, %c0_i32, %c0_i32_0 : i32, i32, i32
  }
  func.func @transform_2(%arg0: i32) -> (i32, i32, i32) {
    %c0_i32 = arith.constant 0 : i32
    %c0_i32_0 = arith.constant 0 : i32
    %c0_i32_1 = arith.constant 0 : i32
    %c0_i32_2 = arith.constant 0 : i32
    return %c0_i32, %c0_i32_0, %c0_i32_1 : i32, i32, i32
  }
  func.func @transform_3(%arg0: i32) -> (i32, i32) {
    %c0_i32 = arith.constant 0 : i32
    %c0_i32_0 = arith.constant 0 : i32
    %c0_i32_1 = arith.constant 0 : i32
    return %c0_i32, %c0_i32_0 : i32, i32
  }
  func.func @transform_4(%arg0: i32) -> (i32, i32) {
    %c0_i32 = arith.constant 0 : i32
    %c0_i32_0 = arith.constant 0 : i32
    %c0_i32_1 = arith.constant 0 : i32
    return %c0_i32, %c0_i32_0 : i32, i32
  }
  func.func @transform_5(%arg0: i32) -> (i32, i32) {
    %c0_i32 = arith.constant 0 : i32
    %c0_i32_0 = arith.constant 0 : i32
    %c0_i32_1 = arith.constant 0 : i32
    return %c0_i32, %c0_i32_0 : i32, i32
  }
  func.func @transform_6(%arg0: i32) -> (i32, i32) {
    %c0_i32 = arith.constant 0 : i32
    %c0_i32_0 = arith.constant 0 : i32
    %c0_i32_1 = arith.constant 0 : i32
    return %c0_i32, %c0_i32_0 : i32, i32
  }
  func.func @transform_7(%arg0: i32) -> (i32, i32) {
    %c0_i32 = arith.constant 0 : i32
    %c0_i32_0 = arith.constant 0 : i32
    %c0_i32_1 = arith.constant 0 : i32
    return %c0_i32, %c0_i32_0 : i32, i32
  }
  func.func @transform_8(%arg0: i32) -> (i32, i32, i32) {
    %c0_i32 = arith.constant 0 : i32
    %c0_i32_0 = arith.constant 0 : i32
    %c0_i32_1 = arith.constant 0 : i32
    return %arg0, %c0_i32, %c0_i32_0 : i32, i32, i32
  }
}

</mosaic_0001>

<bundles_post_ra>
// kernel: tpu_custom_call.1
= control target key start
LH: loop header
LB: loop body
LE: loop exit
PB: predicated region body
PF: predicated region fallthrough
CT: control target
= control target key end

     0   :  { %13 = vsyncpa [#allocation3], 0  ;;  %s2074_s0 = inlined_call_operand.vmem [shape: f32[2,8,32], index: 0, kind: input, shape index: {}]   ;;  %s2075_s1 = inlined_call_operand.vmem [shape: f32[2,4,32], index: 1, kind: input, shape index: {}]   ;;  %s2076_s2 = inlined_call_operand.vmem [shape: bf16[6,32,16], index: 2, kind: input, shape index: {}]   ;;  %s2077_s3 = inlined_call_operand.vmem [shape: bf16[32,32], index: 3, kind: input, shape index: {}]   ;;  %s2078_s4 = inlined_call_operand.vmem [shape: bf16[32,64], index: 4, kind: input, shape index: {}]   ;;  %s2079_s5 = inlined_call_operand.vmem [shape: bf16[64,32], index: 5, kind: input, shape index: {}]   ;;  %s2080_s6 = inlined_call_operand.vmem [shape: f32[2,32], index: 6, kind: input, shape index: {}]   ;;  %s2081_s7 = inlined_call_operand.vmem [shape: f32[1,64], index: 7, kind: input, shape index: {}]   ;;  %s2082_s8 = inlined_call_operand.hbm [shape: f32[2,8,32], index: 8, kind: output, shape index: {}]  }
   0x1   :  { %15 = vsyncpa [#allocation3 + $0x1], 0  ;;  %s1797_s27 = smov 0   ;;  %s1799_s28 = smov 0  }
   0x2   :  { %s1801_s29 = smov 0   ;;  %s1803_s30 = smov 0  }
   0x3 LB: > { %s1818_s9 = sadd.s32 4294967295, %s1746_s30   ;;  %s1404_s10 = sadd.s32 4294967294, %s1746_s30   ;;  %s1746_s30 = sphi %s1803_s30, %s2088_s30   ;;  %s1742_s29 = sphi %s1801_s29, %s2087_s29   ;;  %s1738_s28 = sphi %s1799_s28, %s2086_s28   ;;  %s1734_s27 = sphi %s1797_s27, %s2085_s27  }
   0x4   : > { %s1822_s11 = sadd.s32 1, %s1746_s30   ;;  %s206_s12 = sadd.s32 1, %s1742_s29 }
   0x5   : > { %s203_s13 = ssub.s32 %s1746_s30, %s1822_s11  ;;  %p216_p0 = scmp.ne.s32.totalorder %s1742_s29, %s1738_s28 }
   0x6   : > { %p204_p1 = scmp.eq.s32.totalorder %s203_s13, 0  ;;  %p217_p2 = scmp.eq.s32.totalorder %s1818_s9, 1 }
   0x7   : > { %p222_p3 = scmp.ne.s32.totalorder %s1738_s28, %s1734_s27  ;;  %p223_p4 = scmp.eq.s32.totalorder %s1404_s10, 1 }
   0x8   : > { %s1833_s14 = scalar_select %p204_p1, %s1742_s29, %s206_s12  }
   0x9   : > { %p1835_p5 = por %p217_p2, %p216_p0  ;;  %p1839_p6 = por %p223_p4, %p222_p3 }
   0xa   : > { %p1407_p7 = scmp.ge.s32.totalorder %s1746_s30, 1  ;;  %p273_p8 = scmp.lt.s32.totalorder %s1746_s30, 3 }
   0xc   : > { %p274_p9 = pnand %p1407_p7, %p273_p8 }
   0xd   : > { %p310_p10 = scmp.lt.s32.totalorder (!%p274_p9), %s1818_s9, 1  ;;  %v337_v0 = vlaneseq (!%p274_p9)  ;;  %vm321_vm0 = vcmask (!%p274_p9), 261120   ;;  %v1650_v15 = vld [vmem:[%s2076_s2] sm:$0xff] (!%p274_p9)   ;;  %v1748_v17 = vmov (!%p274_p9), 0.0   ;;  %v1652_v18 = vld [vmem:[%s2076_s2 + $0x8] sm:$0xff] (!%p274_p9)   ;;  %vm1749_vm1 = vmmov (!%p274_p9), 0  }
   0xe   : > { %277 = sbr.rel (%p274_p9) target bundleno = 3463 (0xd87), region = 52  ;;  %v1651_v16 = vld [vmem:[%s2076_s2 + $0x40] sm:$0xff] (!%p274_p9)   ;;  %1508 = vmatprep.subr.bf16.mxu1 (!%p274_p9), %v1748_v17  ;;  %1524 = vmatprep.subr.bf16.mxu0 (!%p274_p9), %v1748_v17  ;;  %v1653_v19 = vld [vmem:[%s2076_s2 + $0x48] sm:$0xff] (!%p274_p9)   ;;  %vm665_vm2 = vcmask (!%p274_p9), 1043456   ;;  %vm522_vm3 = vcmask (!%p274_p9), 130048   ;;  %v1656_v55 = vld [vmem:[%s2076_s2 + $0x10] sm:$0xff] (!%p274_p9)  }
   0xf   : > { %v338_v1 = vshrl.u32 (!%p274_p9), %v337_v0, 7  ;;  %1509 = vmatpush3.bf16.msra.mxu1 (!%p274_p9), %v1650_v15  ;;  %1525 = vmatpush3.bf16.msra.mxu0 (!%p274_p9), %v1651_v16  ;;  %v1654_v31 = vld [vmem:[%s2076_s2 + $0x20] sm:$0xff] (!%p274_p9)   ;;  %v1655_v33 = vld [vmem:[%s2076_s2 + $0x28] sm:$0xff] (!%p274_p9)   ;;  %v1657_v57 = vld [vmem:[%s2076_s2 + $0x18] sm:$0xff] (!%p274_p9)   ;;  %vm648_vm4 = vcmask (!%p274_p9), 64512   ;;  %s1750_s12 = smov (!%p274_p9), 16  }
  0x10   : > { %1510 = vmatprep.subr.bf16.mxu1 (!%p274_p9), %v1748_v17  ;;  %1526 = vmatprep.subr.bf16.mxu0 (!%p274_p9), %v1748_v17  ;;  %v1658_v58 = vld [vmem:[%s2076_s2 + $0x50] sm:$0xff] (!%p274_p9)   ;;  %v1659_v59 = vld [vmem:[%s2076_s2 + $0x58] sm:$0xff] (!%p274_p9)   ;;  %vm1273_vm5 = vcmask (!%p274_p9), 523264   ;;  %s1468_s23 = sshll.u32 (!%p274_p9), %s1818_s9, 7 }
  0x11   : > { %v1151_v2 = vsub.s32 (!%p274_p9), 2, %v338_v1  ;;  %v1156_v3 = vsub.s32 (!%p274_p9), 3, %v338_v1  ;;  %1512 = vmatprep.mubr.msk.bf16.mxu1 (!%p274_p9), %vm1749_vm1, %v1748_v17  ;;  %1528 = vmatprep.mubr.msk.bf16.mxu0 (!%p274_p9), %vm1749_vm1, %v1748_v17  ;;  %v1881_v23 = vsub.s32 (!%p274_p9), 0, %v338_v1  ;;  %v344_v24 = vsub.s32 (!%p274_p9), 1, %v338_v1 }
  0x13   : > { %1511 = vmatpush3.bf16.msra.mxu1 (!%p274_p9), %v1652_v18  ;;  %1527 = vmatpush3.bf16.msra.mxu0 (!%p274_p9), %v1653_v19 }
  0x14   : > { %1516 = vmatprep.subr.bf16.mxu1 (!%p274_p9), %v1748_v17  ;;  %1538 = vmatprep.subr.bf16.mxu0 (!%p274_p9), %v1748_v17 }
  0x15   : > { %s311_s17 = scalar_select %p310_p10, %s1818_s9, 1 }
  0x17   : > { %s1409_s18 = sshll.u32 %s311_s17, 3  ;;  %s1410_s19 = sshll.u32 %s311_s17, 2 }
  0x18   : > { %s313_s22 = scalar_lea.vmem %s2074_s0, %s1409_s18  ;;  %s317_s25 = scalar_lea.vmem %s2075_s1, %s1410_s19 }
  0x19   : > { %v319_v4 = vld [vmem:[%s313_s22] sm:$0xff]  ;;  %s307_s19 = sand.u32 1, %s1738_s28   ;;  %s1751_s17 = smov [#allocation2]  }
  0x1a   : > { %v320_v5 = vld [vmem:[%s317_s25] sm:$0xf]  ;;  %v322_v6 = vsel %vm321_vm0, %v319_v4, 0.0  ;;  %s1408_s20 = sshll.u32 %s307_s19, 3  ;;  %s1320_s9 = scalar_lea.sflag [#allocation3], %s307_s19 }
  0x1b   : > { %v336_v7 = vadd.f32 1.0, %v320_v5  ;;  %v1854_v8 = vrot.slane %v320_v5, %v1156_v3  ;;  %323 = vadd.xlane.f32.xlu0 %v322_v6  ;;  %v345_v27 = vrot.slane %v320_v5, %v344_v24  ;;  %s309_s24 = scalar_lea.vmem [#allocation2], %s1408_s20  ;;  %s1688_s18 = sshll.u32 %s1751_s17, 4  ;;  %s1689_s18 = int_to_ptr.vmem [resolvable:$false] %s1688_s18 }
  0x1c   : > { %s1333_s25 = sshll.u32 %s309_s24, 4  ;;  %s1690_s20 = scalar_lea.vmem %s1689_s18, 256  ;;  %s2033_s25 = int_to_ptr.vmem [resolvable:$true] %s1333_s25 }
  0x1d   : > { %v1856_v9 = vrot.slane %v336_v7, %v1151_v2  ;;  %v340_v25 = vrot.slane %v336_v7, %v1881_v23  ;;  %s1684_s13 = scalar_lea.vmem %s2033_s25, 128  ;;  %p1691_p0 = scmp.lt.s32.totalorder %s2033_s25, %s1689_s18 }
  0x1e   : > { %p1685_p11 = scmp.ne.s32.totalorder %s2033_s25, %s1684_s13  ;;  %p1692_p1 = scmp.lt.s32.totalorder %s1690_s20, %s1684_s13 }
  0x20   : > { %p1686_p12 = pnand %p1685_p11, %p1835_p5  ;;  %p1693_p2 = por %p1692_p1, %p1691_p0 }
  0x22   : > { %p1687_p13 = pneg %p1686_p12 }
  0x24   : > { %p1694_p3 = pnand %p1693_p2, %p1687_p13 }
  0xa8   : > { %v324_v10 = vpop.xlane.xlu0 %323 }
  0xa9   : > { %v326_v11 = vmul.f32 0.03125, %v324_v10 }
  0xab   : > { %v327_v12 = vsub.f32 %v319_v4, %v326_v11 }
  0xad   : > { %v328_v13 = vmul.f32 %v327_v12, %v327_v12 }
  0xaf   : > { %v329_v14 = vsel %vm321_vm0, %v328_v13, 0.0 }
  0xb0   : > { %330 = vadd.xlane.f32.xlu0 %v329_v14 }
 0x13d   : > { %v331_v20 = vpop.xlane.xlu0 %330 }
 0x13e   : > { %v332_v21 = vmul.f32 0.03125, %v331_v20 }
 0x140   : > { %v333_v22 = vadd.f32 0.001, %v332_v21 }
 0x142   : > { %1670 = vrsqrt.f32 %v333_v22 }
 0x14c   : > { %v1671_v26 = vpop.eup %1670 }
 0x14d   : > { %v335_v28 = vmul.f32 %v1671_v26, %v327_v12 }
 0x14f   : > { %v341_v29 = vmul.f32 %v340_v25, %v335_v28 }
 0x151   : > { %v1884_v30 = vadd.f32 %v345_v27, %v341_v29 }
 0x153   : > { %v1891_v32 = vpack.c.bf16 %v1884_v30, %v1884_v30 }
 0x155   : > { %1513 = vmatmul.mubr.msk.bf16.vlgmr.msra.gmra.mrb[0].mxu1 %vm321_vm0, %v1891_v32  ;;  %1529 = vmatmul.mubr.msk.bf16.vlgmr.msra.gmra.mrb[0].mxu0 %vm321_vm0, %v1891_v32 }
 0x156   : > { %1517 = vmatpush3.bf16.msra.mxu1 %v1654_v31  ;;  %1520 = vmatprep.mubr.msk.bf16.mxu1 %vm1749_vm1, %v1748_v17 }
 0x157   : > { %1518 = vmatprep.subr.bf16.mxu1 %v1748_v17  ;;  %1540 = vmatprep.mubr.msk.bf16.mxu0 %vm1749_vm1, %v1748_v17 }
 0x15a   : > { %1519 = vmatpush3.bf16.msra.mxu1 %v1655_v33 }
 0x15b   : > { %1532 = vmatprep.subr.bf16.mxu1 %v1748_v17 }
 0x15d   : > { %1521 = vmatmul.mubr.msk.bf16.vlgmr.msra.gmra.mrb[4].mxu1 %vm321_vm0, %v1891_v32 }
 0x15e   : > { %1534 = vmatprep.mubr.msk.bf16.mxu1 %vm1749_vm1, %v1748_v17 }
 0x228   : > { %v411_v34 = vpop.f32.mrb[0].mxu1  ;;  %v515_v35 = vpop.f32.mrb[0].mxu0 }
 0x229   : > { %v521_v36 = vmul.f32 %v411_v34, %v411_v34  ;;  %v661_v37 = vpack.c.bf16 %v515_v35, %v515_v35  ;;  %v1514_v38 = vpop.f32.mrb[1].mxu1  ;;  %v1530_v39 = vpop.f32.mrb[1].mxu0  ;;  %v530_v56 = vpack.c.bf16 %v411_v34, %v411_v34  ;;  %v1660_v34 = vld [vmem:[%s2076_s2 + $0x30] sm:$0xff]  }
 0x22a   : > { %v414_v40 = vpop.f32.mrb[2].mxu1  ;;  %v518_v41 = vpop.f32.mrb[2].mxu0 }
 0x22b   : > { %v667_v42 = vsel %vm665_vm2, %v661_v37, 0  ;;  %v1515_v43 = vpop.f32.mrb[3].mxu1  ;;  %v1531_v44 = vpop.f32.mrb[3].mxu0  ;;  %v523_v45 = vsel %vm522_vm3, %v521_v36, 0.0  ;;  %v1661_v36 = vld [vmem:[%s2076_s2 + $0x38] sm:$0xff]  }
 0x22c   : > { %1539 = vmatpush3.bf16.msra.mxu0 %v667_v42  ;;  %524 = vadd.xlane.f32.xlu0 %v523_v45 }
 0x22d   : > { %1552 = vmatprep.subr.bf16.mxu0 %v1748_v17 }
 0x230   : > { %v463_v46 = vpop.f32.mrb[4].mxu1 }
 0x231   : > { %531 = vxpose.xlu1.b32.start.end [1/1] (short) (narrow) %v463_v46, 16  ;;  %v1522_v47 = vpop.f32.mrb[5].mxu1  ;;  %v526_v50 = vmul.f32 %v463_v46, %v463_v46 }
 0x232   : > { %v466_v48 = vpop.f32.mrb[6].mxu1 }
 0x233   : > { %v1523_v49 = vpop.f32.mrb[7].mxu1  ;;  %v527_v51 = vsel %vm522_vm3, %v526_v50, 0.0 }
 0x25c   : > { %528 = vadd.xlane.f32.xlu1 %v527_v51 }
 0x2b1   : > { %v547_v52 = vpop.trf.xlu1 }
 0x2b5   : > { %v548_v53 = vpop.trf.xlu1 }
 0x2b6   : > { %v563_v54 = vpack.c.bf16 %v548_v53, %v547_v52 }
 0x2b8   : > { %1533 = vmatpush3.bf16.msra.mxu1 %v563_v54 }
 0x2b9   : > { %1544 = vmatprep.subr.bf16.mxu1 %v1748_v17  ;;  %v525_v61 = vpop.xlane.xlu0 %524 }
 0x2bb   : > { %1535 = vmatmul.mubr.msk.bf16.vlgmr.msra.gmra.mrb[8].mxu1 %vm522_vm3, %v530_v56 }
 0x2bc   : > { %1545 = vmatpush3.bf16.msra.mxu1 %v1656_v55  ;;  %1548 = vmatprep.mubr.msk.bf16.mxu1 %vm1749_vm1, %v1748_v17 }
 0x2bd   : > { %1546 = vmatprep.subr.bf16.mxu1 %v1748_v17 }
 0x2c0   : > { %1547 = vmatpush3.bf16.msra.mxu1 %v1657_v57 }
 0x2c1   : > { %1560 = vmatprep.subr.bf16.mxu1 %v1748_v17 }
 0x2c3   : > { %1549 = vmatmul.mubr.msk.bf16.vlgmr.msra.gmra.mrb[12].mxu1 %vm321_vm0, %v1891_v32 }
 0x2c4   : > { %1561 = vmatpush3.bf16.msra.mxu1 %v1658_v58  ;;  %1564 = vmatprep.mubr.msk.bf16.mxu1 %vm1749_vm1, %v1748_v17 }
 0x2c5   : > { %1562 = vmatprep.subr.bf16.mxu1 %v1748_v17 }
 0x2c8   : > { %1563 = vmatpush3.bf16.msra.mxu1 %v1659_v59 }
 0x2c9   : > { %1574 = vmatprep.subr.bf16.mxu1 %v1748_v17 }
 0x2cb   : > { %1565 = vmatmul.mubr.msk.bf16.vlgmr.msra.gmra.mrb[16].mxu1 %vm321_vm0, %v1891_v32 }
 0x2cc   : > { %1576 = vmatprep.mubr.msk.bf16.mxu1 %vm1749_vm1, %v1748_v17 }
 0x2e9   : > { %v529_v60 = vpop.xlane.xlu1 %528 }
 0x2ea   : > { %607 = vxpose.xlu0.b32.start.end [1/1] (short) (narrow) %v529_v60, 8 }
 0x36a   : > { %v623_v62 = vpop.trf.xlu0 }
 0x36b   : > { %v642_v63 = vrot.slane %v623_v62, %v1881_v23 }
 0x36d   : > { %v643_v1 = vadd.f32 %v642_v63, %v525_v61 }
 0x38e   : > { %v601_v0 = vpop.f32.mrb[8].mxu1 }
 0x38f   : > { %v644_v2 = vmul.f32 2.0, %v601_v0  ;;  %v1536_v3 = vpop.f32.mrb[9].mxu1 }
 0x390   : > { %v604_v4 = vpop.f32.mrb[10].mxu1 }
 0x391   : > { %v645_v5 = vsub.f32 %v643_v1, %v644_v2  ;;  %v1537_v6 = vpop.f32.mrb[11].mxu1 }
 0x393   : > { %v646_v7 = vsub.f32 0.0, %v645_v5 }
 0x395   : > { %v647_v10 = vmul.f32 0.25, %v646_v7 }
 0x396   : > { %v770_v11 = vpop.f32.mrb[12].mxu1 }
 0x397   : > { %v1550_v12 = vpop.f32.mrb[13].mxu1  ;;  %v649_v13 = vsel %vm648_vm4, %v647_v10, -inf  ;;  %v880_v45 = vmul.f32 %v770_v11, %v770_v11  ;;  %v888_v51 = vpack.c.bf16 %v770_v11, %v770_v11 }
 0x398   : > { %650 = vmax.xlane.f32.xlu1 %v649_v13  ;;  %v773_v14 = vpop.f32.mrb[14].mxu1  ;;  %v1662_v12 = vld [vmem:[%s2077_s3] sm:$0xff]   ;;  %v1663_v13 = vld [vmem:[%s2077_s3 + $0x8] sm:$0xff]  }
 0x399   : > { %v1551_v15 = vpop.f32.mrb[15].mxu1 }
 0x39e   : > { %v874_v16 = vpop.f32.mrb[16].mxu1 }
 0x39f   : > { %v1018_v18 = vpack.c.bf16 %v874_v16, %v874_v16  ;;  %v1566_v19 = vpop.f32.mrb[17].mxu1 }
 0x3a0   : > { %v877_v20 = vpop.f32.mrb[18].mxu1 }
 0x3a1   : > { %v1023_v21 = vsel %vm665_vm2, %v1018_v18, 0  ;;  %v1567_v22 = vpop.f32.mrb[19].mxu1 }
 0x3a2   : > { %1575 = vmatpush3.bf16.msra.mxu1 %v1023_v21  ;;  %v1453_v22 = vld [vmem:[%s2080_s6] ss:$0 sm:$0xff] }
 0x3a3   : > { %1588 = vmatprep.subr.bf16.mxu1 %v1748_v17 }
 0x425   : > { %v651_v24 = vpop.xlane.xlu1 %650 }
 0x426   : > { %v652_v25 = vsub.f32 %v647_v10, %v651_v24 }
 0x428   : > { %v653_v26 = vmul.f32 1.442695, %v652_v25 }
 0x42a   : > { %1672 = vpow2.f32 %v653_v26 }
 0x434   : > { %v1673_v27 = vpop.eup %1672 }
 0x435   : > { %v655_v28 = vsel %vm648_vm4, %v1673_v27, 0.0 }
 0x436   : > { %656 = vadd.xlane.f32.xlu1 %v655_v28 }
 0x4c3   : > { %v657_v29 = vpop.xlane.xlu1 %656 }
 0x4c4   : > { %1674 = vrcp.f32 %v657_v29 }
 0x4ce   : > { %v1675_v31 = vpop.eup %1674 }
 0x4cf   : > { %v659_v33 = vmul.f32 %v1675_v31, %v1673_v27 }
 0x4d1   : > { %v660_v35 = vpack.c.bf16 %v659_v33, %v659_v33 }
 0x4d3   : > { %1541 = vmatmul.mubr.msk.bf16.vlgmr.msra.gmra.mrb[4].mxu0 %vm648_vm4, %v660_v35 }
 0x4d4   : > { %1553 = vmatpush3.bf16.msra.mxu0 %v1660_v34  ;;  %1556 = vmatprep.mubr.msk.bf16.mxu0 %vm1749_vm1, %v1748_v17 }
 0x4d5   : > { %1554 = vmatprep.subr.bf16.mxu0 %v1748_v17 }
 0x4d8   : > { %1555 = vmatpush3.bf16.msra.mxu0 %v1661_v36 }
 0x4d9   : > { %1568 = vmatprep.subr.bf16.mxu0 %v1748_v17 }
 0x4db   : > { %1557 = vmatmul.mubr.msk.bf16.vlgmr.msra.gmra.mrb[8].mxu0 %vm321_vm0, %v1891_v32  ;;  %v881_v32 = vsel %vm522_vm3, %v880_v45, 0.0 }
 0x4dc   : > { %1570 = vmatprep.mubr.msk.bf16.mxu0 %vm1749_vm1, %v1748_v17 }
 0x5a6   : > { %v1962_v37 = vpop.f32.mrb[4].mxu0 }
 0x5a7   : > { %v1542_v38 = vpop.f32.mrb[5].mxu0 }
 0x5a8   : > { %v706_v39 = vpop.f32.mrb[6].mxu0  ;;  %v1664_v38 = vld [vmem:[%s2078_s4] sm:$0xff]  }
 0x5a9   : > { %v1543_v40 = vpop.f32.mrb[7].mxu0 }
 0x5ae   : > { %v822_v41 = vpop.f32.mrb[8].mxu0 }
 0x5af   : > { %v884_v42 = vmul.f32 %v822_v41, %v822_v41  ;;  %889 = vxpose.xlu1.b32.start.end [1/1] (short) (narrow) %v822_v41, 16  ;;  %v1558_v43 = vpop.f32.mrb[9].mxu0 }
 0x5b0   : > { %v825_v44 = vpop.f32.mrb[10].mxu0 }
 0x5b1   : > { %v1559_v46 = vpop.f32.mrb[11].mxu0  ;;  %v885_v47 = vsel %vm522_vm3, %v884_v42, 0.0 }
 0x5b2   : > { %886 = vadd.xlane.f32.xlu0 %v885_v47  ;;  %v1666_v47 = vld [vmem:[%s2079_s5] sm:$0xff]  }
 0x5b6   : > { %882 = vadd.xlane.f32.xlu0 %v881_v32  ;;  %v1667_v32 = vld [vmem:[%s2079_s5 + $0x8] sm:$0xff]  }
 0x62f   : > { %v905_v48 = vpop.trf.xlu1 }
 0x633   : > { %v906_v49 = vpop.trf.xlu1 }
 0x634   : > { %v921_v50 = vpack.c.bf16 %v906_v49, %v905_v48  ;;  %v1457_v48 = vld [vmem:[%s2081_s7] ss:$0 sm:$0xff] }
 0x636   : > { %1569 = vmatpush3.bf16.msra.mxu0 %v921_v50 }
 0x637   : > { %1580 = vmatprep.subr.bf16.mxu0 %v1748_v17 }
 0x639   : > { %1571 = vmatmul.mubr.msk.bf16.vlgmr.msra.gmra.mrb[12].mxu0 %vm522_vm3, %v888_v51 }
 0x63a   : > { %1584 = vmatprep.mubr.msk.bf16.mxu0 %vm1749_vm1, %v1748_v17  ;;  %1581 = vmatpush3.bf16.msra.mxu0 %v1662_v12 }
 0x63b   : > { %1582 = vmatprep.subr.bf16.mxu0 %v1748_v17 }
 0x63e   : > { %1583 = vmatpush3.bf16.msra.mxu0 %v1663_v13 }
 0x63f   : > { %v887_v52 = vpop.xlane.xlu0 %886  ;;  %1596 = vmatprep.subr.bf16.mxu0 %v1748_v17 }
 0x640   : > { %965 = vxpose.xlu0.b32.start.end [1/1] (short) (narrow) %v887_v52, 8 }
 0x643   : > { %v883_v53 = vpop.xlane.xlu0 %882 }
 0x6c0   : > { %v981_v54 = vpop.trf.xlu0 }
 0x6c1   : > { %v1000_v55 = vrot.slane %v981_v54, %v1881_v23 }
 0x6c3   : > { %v1001_v57 = vadd.f32 %v1000_v55, %v883_v53 }
 0x70c   : > { %v959_v56 = vpop.f32.mrb[12].mxu0 }
 0x70d   : > { %v1002_v58 = vmul.f32 2.0, %v959_v56  ;;  %v1572_v59 = vpop.f32.mrb[13].mxu0 }
 0x70e   : > { %v962_v60 = vpop.f32.mrb[14].mxu0 }
 0x70f   : > { %v1003_v61 = vsub.f32 %v1001_v57, %v1002_v58  ;;  %v1573_v62 = vpop.f32.mrb[15].mxu0 }
 0x711   : > { %v1004_v63 = vsub.f32 0.0, %v1003_v61 }
 0x713   : > { %v1005_v0 = vmul.f32 0.25, %v1004_v63  ;;  %v1461_v63 = vld [vmem:[%s2080_s6 + $0x1] ss:$0 sm:$0xff] }
 0x715   : > { %v1006_v1 = vsel %vm648_vm4, %v1005_v0, -inf }
 0x716   : > { %1007 = vmax.xlane.f32.xlu1 %v1006_v1 }
 0x7a3   : > { %v1008_v2 = vpop.xlane.xlu1 %1007 }
 0x7a4   : > { %v1009_v3 = vsub.f32 %v1005_v0, %v1008_v2 }
 0x7a6   : > { %v1010_v4 = vmul.f32 1.442695, %v1009_v3 }
 0x7a8   : > { %1676 = vpow2.f32 %v1010_v4 }
 0x7b2   : > { %v1677_v5 = vpop.eup %1676 }
 0x7b3   : > { %v1012_v6 = vsel %vm648_vm4, %v1677_v5, 0.0 }
 0x7b4   : > { %1013 = vadd.xlane.f32.xlu1 %v1012_v6 }
 0x841   : > { %v1014_v23 = vpop.xlane.xlu1 %1013 }
 0x842   : > { %1678 = vrcp.f32 %v1014_v23 }
 0x84c   : > { %v1679_v7 = vpop.eup %1678 }
 0x84d   : > { %v1016_v10 = vmul.f32 %v1679_v7, %v1677_v5 }
 0x84f   : > { %v1017_v11 = vpack.c.bf16 %v1016_v10, %v1016_v10 }
 0x851   : > { %1577 = vmatmul.mubr.msk.bf16.vlgmr.msra.gmra.mrb[20].mxu1 %vm648_vm4, %v1017_v11 }
 0x852   : > { %1592 = vmatprep.mubr.msk.bf16.mxu1 %vm1749_vm1, %v1748_v17  ;;  %1589 = vmatpush3.bf16.msra.mxu1 %v1664_v38 }
 0x853   : > { %1590 = vmatprep.subr.bf16.mxu1 %v1748_v17 }
 0x924   : > { %v1059_v14 = vpop.f32.mrb[20].mxu1 }
 0x925   : > { %1066 = vrot.lane.b32.xlu0 %v1059_v14, %s1750_s12  ;;  %v1578_v15 = vpop.f32.mrb[21].mxu1  ;;  %s2031_s12 = scalar_lea.hbm %s2082_s8, %s1468_s23 }
 0x926   : > { %v1062_v16 = vpop.f32.mrb[22].mxu1 }
 0x927   : > { %v1579_v18 = vpop.f32.mrb[23].mxu1 }
 0x997   : > { %v1067_v19 = vpop.permute.xlu0 %1066 }
 0x998   : > { %v1069_v20 = vsel %vm522_vm3, %v1962_v37, %v1067_v19 }
 0x999   : > { %v1070_v21 = vpack.c.bf16 %v1069_v20, %v1069_v20 }
 0x99b   : > { %1585 = vmatmul.mubr.msk.bf16.vlgmr.msra.gmra.mrb[16].mxu0 %vm321_vm0, %v1070_v21 }
 0x99c   : > { %1604 = vmatprep.mubr.msk.bf16.mxu0 %vm1749_vm1, %v1748_v17  ;;  %1597 = vmatpush3.bf16.msra.mxu0 %v1666_v47 }
 0x99d   : > { %1598 = vmatprep.subr.bf16.mxu0 %v1748_v17 }
 0x9a0   : > { %1599 = vmatpush3.bf16.msra.mxu0 %v1667_v32 }
 0x9a1   : > { %1600 = vmatprep.subr.bf16.mxu0 %v1748_v17 }
 0xa6e   : > { %v1129_v24 = vpop.f32.mrb[16].mxu0 }
 0xa6f   : > { %v1130_v25 = vadd.f32 %v1453_v22, %v1129_v24  ;;  %v1586_v26 = vpop.f32.mrb[17].mxu0 }
 0xa70   : > { %v1132_v27 = vpop.f32.mrb[18].mxu0 }
 0xa71   : > { %v1587_v28 = vpop.f32.mrb[19].mxu0  ;;  %v1135_v29 = vadd.f32 %v1130_v25, %v1884_v30  ;;  %v1665_v30 = vld [vmem:[%s2078_s4 + $0x8] sm:$0xff]  }
 0xa72   : > { %1591 = vmatpush3.bf16.msra.mxu1 %v1665_v30 }
 0xa73   : > { %v1136_v31 = vsel %vm321_vm0, %v1135_v29, 0.0 }
 0xa74   : > { %1137 = vadd.xlane.f32.xlu1 %v1136_v31 }
 0xb01   : > { %v1138_v33 = vpop.xlane.xlu1 %1137 }
 0xb02   : > { %v1139_v34 = vmul.f32 0.03125, %v1138_v33 }
 0xb04   : > { %v1140_v35 = vsub.f32 %v1135_v29, %v1139_v34 }
 0xb06   : > { %v1141_v36 = vmul.f32 %v1140_v35, %v1140_v35 }
 0xb08   : > { %v1142_v37 = vsel %vm321_vm0, %v1141_v36, 0.0 }
 0xb09   : > { %1143 = vadd.xlane.f32.xlu1 %v1142_v37 }
 0xb96   : > { %v1144_v39 = vpop.xlane.xlu1 %1143 }
 0xb97   : > { %v1145_v40 = vmul.f32 0.03125, %v1144_v39 }
 0xb99   : > { %v1146_v41 = vadd.f32 0.001, %v1145_v40 }
 0xb9b   : > { %1680 = vrsqrt.f32 %v1146_v41 }
 0xba5   : > { %v1681_v42 = vpop.eup %1680 }
 0xba6   : > { %v1148_v43 = vmul.f32 %v1681_v42, %v1140_v35 }
 0xba8   : > { %v1153_v44 = vmul.f32 %v1856_v9, %v1148_v43  ;;  %v1669_v9 = vld [vmem:[%s2079_s5 + $0x18] sm:$0xff]  }
 0xbaa   : > { %v1158_v45 = vadd.f32 %v1854_v8, %v1153_v44  ;;  %v1668_v8 = vld [vmem:[%s2079_s5 + $0x10] sm:$0xff]  }
 0xbab   : > { %1601 = vmatpush3.bf16.msra.mxu0 %v1668_v8 }
 0xbac   : > { %v1159_v46 = vpack.c.bf16 %v1158_v45, %v1158_v45  ;;  %1602 = vmatprep.subr.bf16.mxu0 %v1748_v17 }
 0xbae   : > { %1593 = vmatmul.mubr.msk.bf16.vlgmr.msra.gmra.mrb[24].mxu1 %vm321_vm0, %v1159_v46 }
 0xbaf   : > { %1603 = vmatpush3.bf16.msra.mxu0 %v1669_v9 }
 0xc81   : > { %v1220_v49 = vpop.f32.mrb[24].mxu1 }
 0xc82   : > { %v1221_v50 = vadd.f32 %v1457_v48, %v1220_v49  ;;  %v1594_v51 = vpop.f32.mrb[25].mxu1 }
 0xc83   : > { %v1223_v52 = vpop.f32.mrb[26].mxu1 }
 0xc84   : > { %v1226_v53 = vmul.f32 %v1221_v50, %v1221_v50  ;;  %v1595_v54 = vpop.f32.mrb[27].mxu1 }
 0xc86   : > { %v1227_v55 = vmul.f32 %v1226_v53, %v1221_v50 }
 0xc88   : > { %v1228_v56 = vmul.f32 0.044715, %v1227_v55 }
 0xc8a   : > { %v1229_v17 = vadd.f32 %v1228_v56, %v1221_v50 }
 0xc8c   : > { %v1230_v57 = vmul.f32 0.7978846, %v1229_v17 }
 0xc8e   : > { %1682 = vtanh.f32 %v1230_v57 }
 0xc98   : > { %v1683_v58 = vpop.eup %1682 }
 0xc99   : > { %v1232_v59 = vadd.f32 1.0, %v1683_v58 }
 0xc9b   : > { %v1233_v60 = vmul.f32 0.5, %v1232_v59 }
 0xc9d   : > { %v1234_v61 = vmul.f32 %v1233_v60, %v1221_v50 }
 0xc9f   : > { %v1235_v62 = vpack.c.bf16 %v1234_v61, %v1234_v61 }
 0xca1   : > { %1605 = vmatmul.mubr.msk.bf16.vlgmr.msra.gmra.mrb[20].mxu0 %vm1273_vm5, %v1235_v62 }
 0xd74   : > { %v1311_v0 = vpop.f32.mrb[20].mxu0 }
 0xd75   : > { %v1312_v1 = vadd.f32 %v1461_v63, %v1311_v0  ;;  %v1606_v2 = vpop.f32.mrb[21].mxu0 }
 0xd76   : > { %v1314_v3 = vpop.f32.mrb[22].mxu0 }
 0xd77   : > { %v1317_v4 = vadd.f32 %v1312_v1, %v1158_v45  ;;  %v1607_v5 = vpop.f32.mrb[23].mxu0 }
 0xd79   : > { %1318 = vst.msk [vmem:[%s309_s24] sm:$0xff] %vm321_vm0, %v1317_v4 }
 0xd7a   : > { %1697 = shalt.err (!%p1694_p3)
}
 0xd7b   : > { %s1698_s19 = scalar_lea.hbm %s2031_s12, 128  ;;  %s1702_s23 = scalar_lea.hbm %s2082_s8, 256 }
 0xd7c   : > { %p1699_p4 = scmp.ne.s32.totalorder %s2031_s12, %s1698_s19  ;;  %p1703_p9 = scmp.lt.u32.totalorder %s2031_s12, %s2082_s8 }
 0xd7d   : > { %p1704_p10 = scmp.lt.u32.totalorder %s1702_s23, %s1698_s19  ;;  %p1706_p12 = scmp.lt.u32.totalorder %s1698_s19, %s2031_s12 }
 0xd7e   : > { %p1700_p7 = pnand %p1699_p4, %p1835_p5 }
 0xd7f   : > { %p1705_p11 = por %p1704_p10, %p1703_p9 }
 0xd80   : > { %p1701_p8 = pneg %p1700_p7 }
 0xd81   : > { %p1707_p13 = por %p1706_p12, %p1705_p11 }
 0xd83   : > { %p1708_p0 = pnand %p1707_p13, %p1701_p8 }
 0xd85   : > { %1711 = shalt.err (!%p1708_p0)
}
 0xd86   : > { %1608 = dma.vmem_to_hbm [thread:$0]  (%p1835_p5), %s2033_s25, 128, %s2031_s12, %s1320_s9  }
 0xd87 PF: > { %p1614_p1 = scmp.ge.s32.totalorder %s1746_s30, 2  ;;  %s1345_s10 = sand.u32 1, %s1734_s27  }
 0xd88   : > { %s1346_s13 = scalar_lea.sflag [#allocation3], %s1345_s10 }
 0xd89   : > { %p1611_p2 = pnand %p1614_p1, %p1839_p6 }
 0xd8b   : > { %1729 = dma.done.wait (!%p1611_p2), %s1346_s13, 128  }
 0xd8c   : > { %1731 = vsyncadd (!%p1611_p2), %s1346_s13, 4294967168  ;;  %p18_p3 = scmp.ge.s32.totalorder %s1822_s11, 4   ;;  %s2085_s27 = smov %s1738_s28 }
 0xd8d   : > { %s2086_s28 = smov %s1742_s29  ;;  %s2087_s29 = smov %s1833_s14 }
 0xd8e   : > { %s2088_s30 = smov %s1822_s11  ;;  %20 = sbr.rel (!%p18_p3) target bundleno = 3 (0x3), region = 95 }
 0xd95   :  { %1351 = vsyncpa [#allocation3], 1 }
 0xd96   :  { %1353 = vsyncpa [#allocation3 + $0x1], 1 }

</bundles_post_ra>
